<compile_context>
chip_gen: v6e
topology: v6e:2x2x1
jax: 0.10.0
libtpu: 0.0.40
codegen_flags: <defaults>
</compile_context>

<pallas_src>
import jax
import jax.numpy as jnp
from jax.experimental import pallas as pl
from jax.experimental.pallas import tpu as pltpu


def _quant_mlp_kernel(x_ref, wg_ref, wu_ref, wd_ref, o_ref, acc_ref):
    # x_ref:  (TBJ, M)   wg_ref/wu_ref: (M, TI)   wd_ref: (TI, M)
    # o_ref:  (TBJ, M)   acc_ref: (TBJ, M) f32 scratch (resident across I axis)
    i = pl.program_id(1)

    @pl.when(i == 0)
    def _init():
        acc_ref[...] = jnp.zeros_like(acc_ref)

    x = x_ref[...]                                                    # (TBJ, M)
    gate = jnp.dot(x, wg_ref[...], preferred_element_type=jnp.float32)  # (TBJ, TI)
    up = jnp.dot(x, wu_ref[...], preferred_element_type=jnp.float32)    # (TBJ, TI)
    # SiLU(gate) * up in f32, cast only for the MXU contraction.
    h = (jax.nn.silu(gate) * up).astype(wd_ref.dtype)
    acc_ref[...] += jnp.dot(h, wd_ref[...], preferred_element_type=jnp.float32)

    @pl.when(i == pl.num_programs(1) - 1)
    def _finalize():
        o_ref[...] = acc_ref[...].astype(o_ref.dtype)


def quant_llama_mlp(x, w_gate, w_up, w_down, *,
                    block_rows=256, block_inter=256,
                    compute_dtype=jnp.bfloat16):
    """x: (B, S, M); w_gate/w_up: (M, I); w_down: (I, M) -> (B, S, M)."""
    B, S, M = x.shape
    Mg, I = w_gate.shape
    Mu, Iu = w_up.shape
    Id, Md = w_down.shape
    assert M == Mg == Mu and I == Iu == Id and Md == M
    BJ = B * S
    out_dtype = x.dtype

    xc = x.reshape(BJ, M).astype(compute_dtype)
    wg = w_gate.astype(compute_dtype)
    wu = w_up.astype(compute_dtype)
    wd = w_down.astype(compute_dtype)

    tbj = min(block_rows, BJ)
    ti = min(block_inter, I)
    # Reduction-axis tiles must cover I exactly (padded weight rows would
    # contaminate the accumulator).
    assert I % ti == 0, "intermediate size must be a multiple of the tile"

    grid = (pl.cdiv(BJ, tbj), I // ti)

    itemsize = jnp.dtype(compute_dtype).itemsize
    cost = pl.CostEstimate(
        flops=int(2 * BJ * M * (2 * I) + 2 * BJ * I * M),
        transcendentals=int(BJ * I),                       # sigmoid in SiLU
        bytes_accessed=int((BJ * M + 2 * M * I + I * M) * itemsize
                           + BJ * M * jnp.dtype(out_dtype).itemsize),
    )

    out = pl.pallas_call(
        _quant_mlp_kernel,
        out_shape=jax.ShapeDtypeStruct((BJ, M), out_dtype),
        grid_spec=pltpu.PrefetchScalarGridSpec(
            num_scalar_prefetch=0,
            grid=grid,
            in_specs=[
                pl.BlockSpec((tbj, M), lambda r, i: (r, 0)),   # x: resident over I axis
                pl.BlockSpec((M, ti), lambda r, i: (0, i)),    # W_gate tile
                pl.BlockSpec((M, ti), lambda r, i: (0, i)),    # W_up tile
                pl.BlockSpec((ti, M), lambda r, i: (i, 0)),    # W_down tile
            ],
            out_specs=pl.BlockSpec((tbj, M), lambda r, i: (r, 0)),
            scratch_shapes=[pltpu.VMEM((tbj, M), jnp.float32)],
        ),
        compiler_params=pltpu.CompilerParams(
            dimension_semantics=("parallel", "arbitrary"),
            vmem_limit_bytes=64 * 1024 * 1024,
        ),
        cost_estimate=cost,
    )(xc, wg, wu, wd)

    return out.reshape(B, S, M)


def dequant_4bit(qweight, qzeros, scales, g_idx):
    """GPTQ-v2 style dequant.

    qweight: (in_f // 8, out_f) uint32 -- 8 nibbles packed along in_f
    qzeros:  (groups, out_f // 8) uint32 -- 8 nibbles packed along out_f
    scales:  (groups, out_f) f32
    g_idx:   (in_f,) int32 -- group index per input row
    returns W: (in_f, out_f) f32 so that y = x @ W
    """
    out_f = qweight.shape[1]
    shifts = jnp.arange(8, dtype=jnp.uint32) * 4
    w = (qweight[:, None, :] >> shifts[None, :, None]) & jnp.uint32(0xF)
    w = w.reshape(-1, out_f).astype(jnp.float32)                       # (in_f, out_f)
    z = (qzeros[:, :, None] >> shifts[None, None, :]) & jnp.uint32(0xF)
    z = z.reshape(qzeros.shape[0], out_f).astype(jnp.float32) + 1.0    # (groups, out_f)
    return scales[g_idx] * (w - z[g_idx])


def reference_mlp(x, w_gate, w_up, w_down, compute_dtype=jnp.bfloat16):
    """Plain-JAX reference mirroring the kernel's bf16/f32 precision choices."""
    B, S, M = x.shape
    xc = x.reshape(-1, M).astype(compute_dtype)
    g = jnp.dot(xc, w_gate.astype(compute_dtype), preferred_element_type=jnp.float32)
    u = jnp.dot(xc, w_up.astype(compute_dtype), preferred_element_type=jnp.float32)
    h = (jax.nn.silu(g) * u).astype(compute_dtype)
    o = jnp.dot(h, w_down.astype(compute_dtype), preferred_element_type=jnp.float32)
    return o.reshape(B, S, M).astype(x.dtype)


if __name__ == "__main__":
    # Small shapes consistent with the module: batch=2, seq=8, hidden=32,
    # intermediate_size=64, 4-bit groupsize=16.
    B, S, M = 2, 8, 32
    I = 64
    groupsize = 16

    key = jax.random.PRNGKey(0)
    ks = jax.random.split(key, 7)
    x = jax.random.normal(ks[0], (B, S, M), dtype=jnp.float32)

    # Fused gate_up_proj: in_features=M, out_features=2*I (GPTQ v2 packing).
    qweight_gu = jax.random.bits(ks[1], (M // 8, 2 * I), dtype=jnp.uint32)
    qzeros_gu = jax.random.bits(ks[2], (M // groupsize, (2 * I) // 8), dtype=jnp.uint32)
    scales_gu = jax.random.uniform(ks[3], (M // groupsize, 2 * I), jnp.float32, 0.005, 0.02)
    g_idx_gu = jnp.arange(M, dtype=jnp.int32) // groupsize

    # down_proj: in_features=I, out_features=M.
    qweight_d = jax.random.bits(ks[4], (I // 8, M), dtype=jnp.uint32)
    qzeros_d = jax.random.bits(ks[5], (I // groupsize, M // 8), dtype=jnp.uint32)
    scales_d = jax.random.uniform(ks[6], (I // groupsize, M), jnp.float32, 0.005, 0.02)
    g_idx_d = jnp.arange(I, dtype=jnp.int32) // groupsize

    # One-time dequant in XLA (see TODO(synk) above for in-kernel fusion).
    w_gu = dequant_4bit(qweight_gu, qzeros_gu, scales_gu, g_idx_gu)    # (M, 2I)
    w_gate, w_up = w_gu[:, :I], w_gu[:, I:]
    w_down = dequant_4bit(qweight_d, qzeros_d, scales_d, g_idx_d)      # (I, M)

    out = quant_llama_mlp(x, w_gate, w_up, w_down)
    out = jax.block_until_ready(out)

    ref = reference_mlp(x, w_gate, w_up, w_down)
    assert out.shape == (B, S, M), out.shape
    max_err = float(jnp.max(jnp.abs(out - ref)))
    assert jnp.allclose(out, ref, atol=1e-2, rtol=1e-2), max_err

    print("KERNEL_OK")
</pallas_src>

<mosaic_0001>
module attributes {stable_mosaic.version = 11 : i64} {
  func.func @_quant_mlp_kernel(%arg0: i32, %arg1: i32, %arg2: memref<16x32xbf16, #tpu.memory_space<vmem>>, %arg3: memref<32x64xbf16, #tpu.memory_space<vmem>>, %arg4: memref<32x64xbf16, #tpu.memory_space<vmem>>, %arg5: memref<64x32xbf16, #tpu.memory_space<vmem>>, %arg6: memref<16x32xf32, #tpu.memory_space<vmem>>, %arg7: memref<16x32xf32, #tpu.memory_space<vmem>>) attributes {dimension_semantics = [#tpu.dimension_semantics<parallel>, #tpu.dimension_semantics<arbitrary>], iteration_bounds = array<i64: 1, 1>, scalar_prefetch = 0 : i64, scratch_operands = 1 : i64, tpu.core_type = #tpu.core_type<tc>, window_params = [{transform_indices = @transform_0, window_bounds = array<i64: 16, 32>}, {transform_indices = @transform_1, window_bounds = array<i64: 32, 64>}, {transform_indices = @transform_2, window_bounds = array<i64: 32, 64>}, {transform_indices = @transform_3, window_bounds = array<i64: 64, 32>}, {transform_indices = @transform_4, window_bounds = array<i64: 16, 32>}]} {
    %c0_i32 = arith.constant 0 : i32
    %0 = arith.cmpi eq, %arg1, %c0_i32 : i32
    %1 = arith.extui %0 : i1 to i32
    %c0_i32_0 = arith.constant 0 : i32
    %2 = arith.cmpi ne, %1, %c0_i32_0 : i32
    scf.if %2 {
      %cst_17 = arith.constant 0.000000e+00 : f32
      %24 = vector.broadcast %cst_17 : f32 to vector<16x32xf32>
      %c0_18 = arith.constant 0 : index
      %c0_19 = arith.constant 0 : index
      %25 = vector.load %arg7[%c0_18, %c0_19] : memref<16x32xf32, #tpu.memory_space<vmem>>, vector<16x32xf32>
      tpu.vector_store %arg7[%c0_18, %c0_19], %24 {strides = array<i32>} : memref<16x32xf32, #tpu.memory_space<vmem>>, vector<16x32xf32>,
    } else {
    }
    %c0 = arith.constant 0 : index
    %c0_1 = arith.constant 0 : index
    %3 = vector.load %arg2[%c0, %c0_1] : memref<16x32xbf16, #tpu.memory_space<vmem>>, vector<16x32xbf16>
    %c0_2 = arith.constant 0 : index
    %c0_3 = arith.constant 0 : index
    %4 = vector.load %arg3[%c0_2, %c0_3] : memref<32x64xbf16, #tpu.memory_space<vmem>>, vector<32x64xbf16>
    %cst = arith.constant dense<0.000000e+00> : vector<16x64xf32>
    %5 = tpu.matmul %3, %4, %cst {dimension_numbers = #tpu.dot_dimension_numbers<[1], [0], [0], [1], [0, 0, 1, 1], [], []>} : vector<16x32xbf16>, vector<32x64xbf16>, vector<16x64xf32> -> vector<16x64xf32>
    %c0_4 = arith.constant 0 : index
    %c0_5 = arith.constant 0 : index
    %6 = vector.load %arg4[%c0_4, %c0_5] : memref<32x64xbf16, #tpu.memory_space<vmem>>, vector<32x64xbf16>
    %cst_6 = arith.constant dense<0.000000e+00> : vector<16x64xf32>
    %7 = tpu.matmul %3, %6, %cst_6 {dimension_numbers = #tpu.dot_dimension_numbers<[1], [0], [0], [1], [0, 0, 1, 1], [], []>} : vector<16x32xbf16>, vector<32x64xbf16>, vector<16x64xf32> -> vector<16x64xf32>
    %8 = arith.negf %5 : vector<16x64xf32>
    %9 = math.exp %8 : vector<16x64xf32>
    %cst_7 = arith.constant 1.000000e+00 : f32
    %10 = vector.broadcast %cst_7 : f32 to vector<16x64xf32>
    %11 = arith.addf %10, %9 : vector<16x64xf32>
    %12 = arith.divf %10, %11 : vector<16x64xf32>
    %13 = arith.mulf %5, %12 : vector<16x64xf32>
    %14 = arith.mulf %13, %7 : vector<16x64xf32>
    %15 = arith.truncf %14 : vector<16x64xf32> to vector<16x64xbf16>
    %c0_8 = arith.constant 0 : index
    %c0_9 = arith.constant 0 : index
    %16 = vector.load %arg7[%c0_8, %c0_9] : memref<16x32xf32, #tpu.memory_space<vmem>>, vector<16x32xf32>
    %c0_10 = arith.constant 0 : index
    %c0_11 = arith.constant 0 : index
    %17 = vector.load %arg5[%c0_10, %c0_11] : memref<64x32xbf16, #tpu.memory_space<vmem>>, vector<64x32xbf16>
    %cst_12 = arith.constant dense<0.000000e+00> : vector<16x32xf32>
    %18 = tpu.matmul %15, %17, %cst_12 {dimension_numbers = #tpu.dot_dimension_numbers<[1], [0], [0], [1], [0, 0, 1, 1], [], []>} : vector<16x64xbf16>, vector<64x32xbf16>, vector<16x32xf32> -> vector<16x32xf32>
    %19 = arith.addf %16, %18 : vector<16x32xf32>
    %c0_13 = arith.constant 0 : index
    %c0_14 = arith.constant 0 : index
    %20 = vector.load %arg7[%c0_13, %c0_14] : memref<16x32xf32, #tpu.memory_space<vmem>>, vector<16x32xf32>
    tpu.vector_store %arg7[%c0_13, %c0_14], %19 {strides = array<i32>} : memref<16x32xf32, #tpu.memory_space<vmem>>, vector<16x32xf32>,
    %c0_i32_15 = arith.constant 0 : i32
    %21 = arith.cmpi eq, %arg1, %c0_i32_15 : i32
    %22 = arith.extui %21 : i1 to i32
    %c0_i32_16 = arith.constant 0 : i32
    %23 = arith.cmpi ne, %22, %c0_i32_16 : i32
    scf.if %23 {
      %c0_17 = arith.constant 0 : index
      %c0_18 = arith.constant 0 : index
      %24 = vector.load %arg7[%c0_17, %c0_18] : memref<16x32xf32, #tpu.memory_space<vmem>>, vector<16x32xf32>
      %c0_19 = arith.constant 0 : index
      %c0_20 = arith.constant 0 : index
      %25 = vector.load %arg6[%c0_19, %c0_20] : memref<16x32xf32, #tpu.memory_space<vmem>>, vector<16x32xf32>
      tpu.vector_store %arg6[%c0_19, %c0_20], %24 {strides = array<i32>} : memref<16x32xf32, #tpu.memory_space<vmem>>, vector<16x32xf32>,
    } else {
    }
    return
  }
  func.func @transform_0(%arg0: i32, %arg1: i32) -> (i32, i32) {
    %c0_i32 = arith.constant 0 : i32
    %c0_i32_0 = arith.constant 0 : i32
    return %arg0, %c0_i32 : i32, i32
  }
  func.func @transform_1(%arg0: i32, %arg1: i32) -> (i32, i32) {
    %c0_i32 = arith.constant 0 : i32
    %c0_i32_0 = arith.constant 0 : i32
    return %c0_i32, %arg1 : i32, i32
  }
  func.func @transform_2(%arg0: i32, %arg1: i32) -> (i32, i32) {
    %c0_i32 = arith.constant 0 : i32
    %c0_i32_0 = arith.constant 0 : i32
    return %c0_i32, %arg1 : i32, i32
  }
  func.func @transform_3(%arg0: i32, %arg1: i32) -> (i32, i32) {
    %c0_i32 = arith.constant 0 : i32
    %c0_i32_0 = arith.constant 0 : i32
    return %arg1, %c0_i32 : i32, i32
  }
  func.func @transform_4(%arg0: i32, %arg1: i32) -> (i32, i32) {
    %c0_i32 = arith.constant 0 : i32
    %c0_i32_0 = arith.constant 0 : i32
    return %arg0, %c0_i32 : i32, i32
  }
}

</mosaic_0001>

<bundles_post_ra>
// kernel: tpu_custom_call.1
= control target key start
LH: loop header
LB: loop body
LE: loop exit
PB: predicated region body
PF: predicated region fallthrough
CT: control target
= control target key end

     0   :  { %v371_v1 = vmov 0.0   ;;  %vm372_vm0 = vmmov 0   ;;  %vm23_vm1 = vcmask 261120   ;;  %s439_s0 = inlined_call_operand.vmem [shape: bf16[16,32], index: 0, kind: input, shape index: {}]   ;;  %s440_s1 = inlined_call_operand.vmem [shape: bf16[32,64], index: 1, kind: input, shape index: {}]   ;;  %s441_s2 = inlined_call_operand.vmem [shape: bf16[32,64], index: 2, kind: input, shape index: {}]   ;;  %s442_s3 = inlined_call_operand.vmem [shape: bf16[64,32], index: 3, kind: input, shape index: {}]   ;;  %s443_s4 = inlined_call_operand.hbm [shape: f32[16,32], index: 4, kind: output, shape index: {}]  }
   0x1   :  { %v332_v0 = vld [vmem:[%s440_s1 + $0x8] sm:$0xff]   ;;  %299 = vmatprep.subr.bf16.mxu1 %v371_v1  ;;  %315 = vmatprep.subr.bf16.mxu0 %v371_v1  ;;  %v333_v2 = vld [vmem:[%s440_s1] sm:$0xff]   ;;  %24 = vst.msk [vmem:[#allocation2] sm:$0xff] %vm23_vm1, %v371_v1  ;;  %25 = vst.msk [vmem:[#allocation2 + $0x8] sm:$0xff] %vm23_vm1, %v371_v1 }
   0x2   :  { %300 = vmatpush3.bf16.msra.mxu1 %v332_v0  ;;  %303 = vmatprep.mubr.msk.bf16.mxu1 %vm372_vm0, %v371_v1  ;;  %v334_v3 = vld [vmem:[%s439_s0] sm:$0xff]   ;;  %v335_v4 = vld [vmem:[%s441_s2 + $0x8] sm:$0xff]  }
   0x3   :  { %301 = vmatprep.subr.bf16.mxu1 %v371_v1  ;;  %323 = vmatprep.mubr.msk.bf16.mxu0 %vm372_vm0, %v371_v1 }
   0x6   :  { %302 = vmatpush3.bf16.msra.mxu1 %v333_v2 }
   0x7   :  { %307 = vmatprep.subr.bf16.mxu1 %v371_v1 }
   0x8   :  { %9 = vsyncpa [#allocation4], 0  ;;  %v336_v5 = vld [vmem:[%s441_s2] sm:$0xff]   ;;  %v337_v6 = vld [vmem:[%s442_s3 + $0x18] sm:$0xff]   ;;  %vm202_vm2 = vcmask 523264  }
   0x9   :  { %304 = vmatmul.mubr.msk.bf16.vlgmr.msra.gmra.mxu1 %vm23_vm1, %v334_v3  ;;  %316 = vmatpush3.bf16.msra.mxu0 %v337_v6  ;;  %v338_v7 = vld [vmem:[%s442_s3 + $0x10] sm:$0xff]   ;;  %v339_v8 = vld [vmem:[%s442_s3 + $0x8] sm:$0xff]   ;;  %v340_v9 = vld [vmem:[%s442_s3] sm:$0xff]   ;;  %s373_s3 = smov [#allocation3]  }
   0xa   :  { %308 = vmatpush3.bf16.msra.mxu1 %v335_v4  ;;  %311 = vmatprep.mubr.msk.bf16.mxu1 %vm372_vm0, %v371_v1  ;;  %v168_v31 = vld [vmem:[#allocation2] sm:$0xff]  ;;  %v169_v35 = vld [vmem:[#allocation2 + $0x8] sm:$0xff]  ;;  %s263_s30 = sshll.u32 %s373_s3, 4  ;;  %s264_s30 = int_to_ptr.vmem [resolvable:$true] %s263_s30 }
   0xb   :  { %309 = vmatprep.subr.bf16.mxu1 %v371_v1  ;;  %317 = vmatprep.subr.bf16.mxu0 %v371_v1  ;;  %s349_s5 = scalar_lea.vmem %s264_s30, 256  ;;  %p354_p1 = scmp.lt.s32.totalorder %s264_s30, %s264_s30 }
   0xc   :  { %p350_p0 = scmp.ne.s32.totalorder %s264_s30, %s349_s5  ;;  %p355_p2 = scmp.lt.s32.totalorder %s349_s5, %s349_s5 }
   0xd   :  { %318 = vmatpush3.bf16.msra.mxu0 %v338_v7 }
   0xe   :  { %310 = vmatpush3.bf16.msra.mxu1 %v336_v5  ;;  %319 = vmatprep.subr.bf16.mxu0 %v371_v1  ;;  %p356_p3 = por %p355_p2, %p354_p1 }
  0x10   :  { %p357_p4 = pnand %p356_p3, %p350_p0 }
  0x11   :  { %312 = vmatmul.mubr.msk.bf16.vlgmr.msra.gmra.mxu1 %vm23_vm1, %v334_v3  ;;  %320 = vmatpush3.bf16.msra.mxu0 %v339_v8 }
  0x12   :  { %321 = vmatprep.subr.bf16.mxu0 %v371_v1 }
  0x15   :  { %322 = vmatpush3.bf16.msra.mxu0 %v340_v9 }
  0xc9   :  { %v87_v10 = vpop.f32.mrf.mxu1 }
  0xca   :  { %v281_v11 = vmul.f32 -1.442695, %v87_v10 }
  0xcb   :  { %v305_v12 = vpop.f32.mrf.mxu1 }
  0xcc   :  { %341 = vpow2.f32 %v281_v11 }
  0xcd   :  { %v90_v13 = vpop.f32.mrf.mxu1 }
  0xce   :  { %v282_v14 = vmul.f32 -1.442695, %v90_v13 }
  0xcf   :  { %v306_v15 = vpop.f32.mrf.mxu1 }
  0xd0   :  { %343 = vpow2.f32 %v282_v14 }
  0xd1   :  { %v144_v16 = vpop.f32.mrf.mxu1 }
  0xd3   :  { %v313_v17 = vpop.f32.mrf.mxu1 }
  0xd5   :  { %v147_v18 = vpop.f32.mrf.mxu1 }
  0xd7   :  { %v314_v19 = vpop.f32.mrf.mxu1 }
  0xd9   :  { %v342_v20 = vpop.eup %341 }
  0xda   :  { %v157_v21 = vadd.f32 1.0, %v342_v20 }
  0xdc   :  { %345 = vrcp.f32 %v157_v21 }
  0xdd   :  { %v344_v22 = vpop.eup %343 }
  0xde   :  { %v158_v23 = vadd.f32 1.0, %v344_v22 }
  0xe0   :  { %347 = vrcp.f32 %v158_v23 }
  0xe9   :  { %v346_v24 = vpop.eup %345 }
  0xea   :  { %v163_v25 = vmul.f32 %v346_v24, %v87_v10 }
  0xec   :  { %v165_v28 = vmul.f32 %v163_v25, %v144_v16 }
  0xed   :  { %v348_v26 = vpop.eup %347 }
  0xee   :  { %v164_v27 = vmul.f32 %v348_v26, %v90_v13 }
  0xf0   :  { %v166_v29 = vmul.f32 %v164_v27, %v147_v18 }
  0xf2   :  { %v167_v30 = vpack.c.bf16 %v166_v29, %v165_v28 }
  0xf4   :  { %324 = vmatmul.mubr.msk.bf16.vlgmr.msra.gmra.mxu0 %vm202_vm2, %v167_v30 }
 0x1b4   :  { %v240_v32 = vpop.f32.mrf.mxu0 }
 0x1b5   :  { %v247_v33 = vadd.f32 %v240_v32, %v168_v31 }
 0x1b6   :  { %v325_v34 = vpop.f32.mrf.mxu0 }
 0x1b7   :  { %249 = vst.msk [vmem:[#allocation2] sm:$0xff] %vm23_vm1, %v247_v33 }
 0x1b8   :  { %v243_v36 = vpop.f32.mrf.mxu0 }
 0x1b9   :  { %v248_v37 = vadd.f32 %v243_v36, %v169_v35 }
 0x1ba   :  { %v326_v38 = vpop.f32.mrf.mxu0 }
 0x1bb   :  { %250 = vst.msk [vmem:[#allocation2 + $0x8] sm:$0xff] %vm23_vm1, %v248_v37 }
 0x1be   :  { %v254_v39 = vld [vmem:[#allocation2] sm:$0xff] }
 0x1bf   :  { %256 = vst.msk [vmem:[#allocation3] sm:$0xff] %vm23_vm1, %v254_v39 }
 0x1c2   :  { %v255_v40 = vld [vmem:[#allocation2 + $0x8] sm:$0xff] }
 0x1c3   :  { %257 = vst.msk [vmem:[#allocation3 + $0x8] sm:$0xff] %vm23_vm1, %v255_v40 }
 0x1c4   :  { %360 = shalt.err (!%p357_p4)
}
 0x1c5   :  { %s374_s6 = smov 128   ;;  %s375_s7 = smov 8  }
 0x1c6   :  { %269 = dma.vmem_to_hbm [thread:$0]  %s264_s30, 256, %s443_s4, [#allocation4], %s374_s6, %s374_s6, %s375_s7  }
 0x1c7   :  { %369 = dma.done.wait [#allocation4], 256  }
 0x1c8   :  { %370 = vsyncadd [#allocation4], 4294967040 }
 0x1c9   :  { %273 = vsyncpa [#allocation4], 1 }

</bundles_post_ra>
